<compile_context>
chip_gen: v6e
topology: v6e:2x2x1
jax: 0.10.0
libtpu: 0.0.40
codegen_flags: <defaults>
</compile_context>

<pallas_src>
import functools

import jax
import jax.numpy as jnp
from jax.experimental import pallas as pl
from jax.experimental.pallas import tpu as pltpu


def _temporal_block_kernel(x_ref, w1_ref, b1_ref, w2_ref, b2_ref, wd_ref, bd_ref,
                           o_ref, stk1_ref, h1pad_ref, stk2_ref,
                           *, K, dil, pad, use_downsample):
    """One batch element per grid step.

    x_ref    : (1, C_in, PADL + Lp) bf16.  [:, :, :PADL] = zeros (causal left
               pad, PADL is a 128 multiple), then the real sequence, right pad.
    w1_ref   : (C_out, K*C_in)  bf16 im2col-flattened (weight-normed) conv1 weight
    w2_ref   : (C_out, K*C_out) bf16 im2col-flattened (weight-normed) conv2 weight
    wd_ref   : (C_out, C_in)    bf16 1x1 downsample weight (unused if identity residual)
    b*_ref   : (C_out, 1)       f32 biases
    o_ref    : (1, C_out, Lp)   f32 output (lane-dense; caller slices back to L)
    stk1_ref : (K*C_in,  Lp)    bf16 scratch: im2col stack for conv1
    h1pad_ref: (C_out, PADL+Lp) bf16 scratch: conv1 activations at aligned offset
    stk2_ref : (K*C_out, Lp)    bf16 scratch: im2col stack for conv2
    """
    C_in = x_ref.shape[1]
    C_out, Lp = o_ref.shape[1], o_ref.shape[2]
    PADL = x_ref.shape[2] - Lp

    # ---- conv1 (dilated, causal): K shifted bf16 views stacked along the
    #      contraction axis, then a single bf16 MXU matmul + bias + ReLU ----
    for k in range(K):
        off = PADL - pad + k * dil                     # zeros fill the causal pad
        stk1_ref[k * C_in:(k + 1) * C_in, :] = x_ref[0, :, off:off + Lp]
    h1 = jnp.dot(w1_ref[...], stk1_ref[...], preferred_element_type=jnp.float32)
    h1 = jnp.maximum(h1 + b1_ref[...], 0.0)
    # TODO(synk): dropout1 / dropout2 are identity here (eval / inference mode).

    # ---- conv2 (dilated, causal): stage h1 (single f32->bf16 cast) at a
    #      128-aligned lane offset (unmasked bulk store), rebuild the shifted
    #      stack, single matmul ----
    h1pad_ref[:, :PADL] = jnp.zeros((C_out, PADL), jnp.bfloat16)
    h1pad_ref[:, PADL:] = h1.astype(jnp.bfloat16)
    for k in range(K):
        off = PADL - pad + k * dil
        stk2_ref[k * C_out:(k + 1) * C_out, :] = h1pad_ref[:, off:off + Lp]
    h2 = jnp.dot(w2_ref[...], stk2_ref[...], preferred_element_type=jnp.float32)
    h2 = jnp.maximum(h2 + b2_ref[...], 0.0)

    # ---- residual branch: 1x1 conv downsample, or identity when C_in==C_out ----
    x_res = x_ref[0, :, PADL:]                         # bf16, lane-aligned slice
    if use_downsample:
        res = jnp.dot(wd_ref[...], x_res,
                      preferred_element_type=jnp.float32) + bd_ref[...]
    else:
        res = x_res.astype(jnp.float32)

    # ---- final ReLU(out + res), lane-dense unmasked store ----
    o_ref[0] = jnp.maximum(h2 + res, 0.0)


def temporal_block_forward(x, w1, b1, w2, b2, wd, bd, *, kernel_size, dilation, padding):
    """wd/bd may be None when n_inputs == n_outputs (identity residual)."""
    B, C_in, L = x.shape
    C_out = w1.shape[0]
    K = kernel_size
    assert padding == (K - 1) * dilation, "causal TCN block needs padding == (K-1)*dilation"

    use_downsample = wd is not None
    if not use_downsample:
        assert C_in == C_out, "identity residual requires n_inputs == n_outputs"
        wd = jnp.eye(C_out, dtype=jnp.float32)        # placeholder, unused in-kernel
        bd = jnp.zeros((C_out,), jnp.float32)

    LANE = 128
    Lp = ((L + LANE - 1) // LANE) * LANE                     # lane-dense seq extent
    PADL = max(LANE, ((padding + LANE - 1) // LANE) * LANE)  # aligned causal pad region

    # Left pad (causal zeros, lane-aligned region) + right pad to lane multiple.
    x_p = jnp.pad(x, ((0, 0), (0, 0), (PADL, Lp - L))).astype(jnp.bfloat16)

    # im2col weight flattening with leading tap order: W_flat[o, k*C + i] = w[o, i, k].
    w1_f = jnp.transpose(w1, (0, 2, 1)).reshape(C_out, K * C_in).astype(jnp.bfloat16)
    w2_f = jnp.transpose(w2, (0, 2, 1)).reshape(C_out, K * C_out).astype(jnp.bfloat16)
    wd_b = wd.astype(jnp.bfloat16)
    b1c = b1.reshape(C_out, 1).astype(jnp.float32)
    b2c = b2.reshape(C_out, 1).astype(jnp.float32)
    bdc = bd.reshape(C_out, 1).astype(jnp.float32)

    kern = functools.partial(_temporal_block_kernel, K=K, dil=dilation, pad=padding,
                             use_downsample=use_downsample)

    flops = 2 * B * Lp * (K * C_in * C_out + K * C_out * C_out
                          + (C_in * C_out if use_downsample else 0))
    bytes_accessed = ((B * C_in * (PADL + Lp) + C_out * K * C_in
                       + C_out * K * C_out + C_out * C_in) * 2
                      + 3 * C_out * 4 + B * C_out * Lp * 4)

    out = pl.pallas_call(
        kern,
        out_shape=jax.ShapeDtypeStruct((B, C_out, Lp), jnp.float32),
        grid_spec=pltpu.PrefetchScalarGridSpec(
            num_scalar_prefetch=0,
            grid=(B,),   # one batch element per step; shards across TCs on v7x
            in_specs=[
                pl.BlockSpec((1, C_in, PADL + Lp), lambda b: (b, 0, 0)),
                pl.BlockSpec((C_out, K * C_in), lambda b: (0, 0)),
                pl.BlockSpec((C_out, 1), lambda b: (0, 0)),
                pl.BlockSpec((C_out, K * C_out), lambda b: (0, 0)),
                pl.BlockSpec((C_out, 1), lambda b: (0, 0)),
                pl.BlockSpec((C_out, C_in), lambda b: (0, 0)),
                pl.BlockSpec((C_out, 1), lambda b: (0, 0)),
            ],
            out_specs=pl.BlockSpec((1, C_out, Lp), lambda b: (b, 0, 0)),
            scratch_shapes=[
                pltpu.VMEM((K * C_in, Lp), jnp.bfloat16),
                pltpu.VMEM((C_out, PADL + Lp), jnp.bfloat16),
                pltpu.VMEM((K * C_out, Lp), jnp.bfloat16),
            ],
        ),
        compiler_params=pltpu.CompilerParams(
            dimension_semantics=("parallel",),
            vmem_limit_bytes=32 * 1024 * 1024,
        ),
        cost_estimate=pl.CostEstimate(flops=flops, transcendentals=0,
                                      bytes_accessed=bytes_accessed),
    )(x_p, w1_f, b1c, w2_f, b2c, wd_b, bdc)
    return out[:, :, :L]


def _weight_norm(v, g):
    # PyTorch weight_norm (dim=0): w[o] = g[o] * v[o] / ||v[o]||_2 over (in, k)
    norm = jnp.sqrt(jnp.sum(v * v, axis=(1, 2), keepdims=True))
    return g.reshape(-1, 1, 1) * v / norm


def _ref_forward(x, w1, b1, w2, b2, wd, bd, *, dilation, padding, mm_dtype=jnp.float32):
    # Pure-JAX reference mirroring the PyTorch graph (eval mode: dropout = id).
    # mm_dtype lets us mirror the kernel's bf16 matmul inputs (f32 accumulation).
    def cast(a):
        return a.astype(mm_dtype)

    def conv_chomp(inp, w, b):
        y = jax.lax.conv_general_dilated(
            cast(inp), cast(w), window_strides=(1,),
            padding=[(padding, padding)], rhs_dilation=(dilation,),
            dimension_numbers=("NCH", "OIH", "NCH"),
            preferred_element_type=jnp.float32)
        if padding > 0:
            y = y[:, :, :-padding]        # Chomp1d
        return y + b.reshape(1, -1, 1)

    h1 = jax.nn.relu(conv_chomp(x, w1, b1))
    h2 = jax.nn.relu(conv_chomp(h1, w2, b2))
    if wd is None:
        res = cast(x).astype(jnp.float32)
    else:
        res = jnp.einsum("oc,bcl->bol", cast(wd), cast(x),
                         preferred_element_type=jnp.float32) + bd.reshape(1, -1, 1)
    return jax.nn.relu(h2 + res)


def _make_weights(key, C_out, C_in, K):
    kv, kb = jax.random.split(key)
    v = 0.01 * jax.random.normal(kv, (C_out, C_in, K), dtype=jnp.float32)
    g = jnp.sqrt(jnp.sum(v * v, axis=(1, 2)))
    w = _weight_norm(v, g)
    b = 0.1 * jax.random.normal(kb, (C_out,), dtype=jnp.float32)
    return w, b


def _check(x, w1, b1, w2, b2, wd, bd, *, K, dilation, padding):
    out = temporal_block_forward(x, w1, b1, w2, b2, wd, bd,
                                 kernel_size=K, dilation=dilation, padding=padding)
    out = jax.block_until_ready(out)
    assert out.shape == (x.shape[0], w1.shape[0], x.shape[2])

    # Tight check against a reference that uses the same bf16 matmul inputs.
    ref_bf16 = _ref_forward(x, w1, b1, w2, b2, wd, bd, dilation=dilation,
                            padding=padding, mm_dtype=jnp.bfloat16)
    assert jnp.allclose(out, ref_bf16, atol=1e-4, rtol=1e-3), \
        "mismatch vs bf16-matmul JAX reference"

    # Looser check against the full-f32 reference (bf16 quantization noise only).
    ref_f32 = _ref_forward(x, w1, b1, w2, b2, wd, bd, dilation=dilation,
                           padding=padding, mm_dtype=jnp.float32)
    assert jnp.allclose(out, ref_f32, atol=5e-3, rtol=5e-2), \
        "mismatch vs f32 JAX reference"


if __name__ == "__main__":
    key = jax.random.PRNGKey(0)

    # Case 1: TemporalBlock(n_inputs=4, n_outputs=8, kernel_size=3, stride=1,
    #                       dilation=2, padding=4, dropout=0.2), eval mode.
    #         C_in != C_out -> downsample (1x1 conv) residual branch.
    B, C_in, C_out, L = 2, 4, 8, 16
    K, dilation = 3, 2
    padding = (K - 1) * dilation  # 4
    kx, k1, k2, kwd, kbd = jax.random.split(key, 5)
    x = jax.random.normal(kx, (B, C_in, L), dtype=jnp.float32)
    w1, b1 = _make_weights(k1, C_out, C_in, K)
    w2, b2 = _make_weights(k2, C_out, C_out, K)
    wd = 0.01 * jax.random.normal(kwd, (C_out, C_in), dtype=jnp.float32)
    bd = 0.1 * jax.random.normal(kbd, (C_out,), dtype=jnp.float32)
    _check(x, w1, b1, w2, b2, wd, bd, K=K, dilation=dilation, padding=padding)

    # Case 2: n_inputs == n_outputs == 8 -> downsample is None (identity residual).
    C = 8
    K2, dil2 = 3, 1
    pad2 = (K2 - 1) * dil2  # 2
    kx2, k3, k4 = jax.random.split(jax.random.PRNGKey(1), 3)
    x2 = jax.random.normal(kx2, (B, C, L), dtype=jnp.float32)
    w1b, b1b = _make_weights(k3, C, C, K2)
    w2b, b2b = _make_weights(k4, C, C, K2)
    _check(x2, w1b, b1b, w2b, b2b, None, None, K=K2, dilation=dil2, padding=pad2)

    print("KERNEL_OK")
</pallas_src>

<mosaic_0001>
module attributes {stable_mosaic.version = 11 : i64} {
  func.func @_temporal_block_kernel(%arg0: i32, %arg1: memref<1x4x256xbf16, #tpu.memory_space<vmem>>, %arg2: memref<8x12xbf16, #tpu.memory_space<vmem>>, %arg3: memref<8x1xf32, #tpu.memory_space<vmem>>, %arg4: memref<8x24xbf16, #tpu.memory_space<vmem>>, %arg5: memref<8x1xf32, #tpu.memory_space<vmem>>, %arg6: memref<8x4xbf16, #tpu.memory_space<vmem>>, %arg7: memref<8x1xf32, #tpu.memory_space<vmem>>, %arg8: memref<1x8x128xf32, #tpu.memory_space<vmem>>, %arg9: memref<12x128xbf16, #tpu.memory_space<vmem>>, %arg10: memref<8x256xbf16, #tpu.memory_space<vmem>>, %arg11: memref<24x128xbf16, #tpu.memory_space<vmem>>) attributes {dimension_semantics = [#tpu.dimension_semantics<parallel>], iteration_bounds = array<i64: 2>, scalar_prefetch = 0 : i64, scratch_operands = 3 : i64, tpu.core_type = #tpu.core_type<tc>, window_params = [{transform_indices = @transform_0, window_bounds = array<i64: 1, 4, 256>}, {pipeline_mode = #tpu.pipeline_mode<synchronous>, transform_indices = @transform_1, window_bounds = array<i64: 8, 12>}, {pipeline_mode = #tpu.pipeline_mode<synchronous>, transform_indices = @transform_2, window_bounds = array<i64: 8, 1>}, {pipeline_mode = #tpu.pipeline_mode<synchronous>, transform_indices = @transform_3, window_bounds = array<i64: 8, 24>}, {pipeline_mode = #tpu.pipeline_mode<synchronous>, transform_indices = @transform_4, window_bounds = array<i64: 8, 1>}, {pipeline_mode = #tpu.pipeline_mode<synchronous>, transform_indices = @transform_5, window_bounds = array<i64: 8, 4>}, {pipeline_mode = #tpu.pipeline_mode<synchronous>, transform_indices = @transform_6, window_bounds = array<i64: 8, 1>}, {transform_indices = @transform_7, window_bounds = array<i64: 1, 8, 128>}]} {
    %c0 = arith.constant 0 : index
    %c0_0 = arith.constant 0 : index
    %c124 = arith.constant 124 : index
    %0 = vector.load %arg1[%c0, %c0_0, %c124] : memref<1x4x256xbf16, #tpu.memory_space<vmem>>, vector<1x4x128xbf16>
    %1 = vector.shape_cast %0 : vector<1x4x128xbf16> to vector<4x128xbf16>
    %c0_1 = arith.constant 0 : index
    %c0_2 = arith.constant 0 : index
    %2 = vector.load %arg9[%c0_1, %c0_2] : memref<12x128xbf16, #tpu.memory_space<vmem>>, vector<4x128xbf16>
    tpu.vector_store %arg9[%c0_1, %c0_2], %1 {strides = array<i32>} : memref<12x128xbf16, #tpu.memory_space<vmem>>, vector<4x128xbf16>,
    %c0_3 = arith.constant 0 : index
    %c0_4 = arith.constant 0 : index
    %c126 = arith.constant 126 : index
    %3 = vector.load %arg1[%c0_3, %c0_4, %c126] : memref<1x4x256xbf16, #tpu.memory_space<vmem>>, vector<1x4x128xbf16>
    %4 = vector.shape_cast %3 : vector<1x4x128xbf16> to vector<4x128xbf16>
    %c4 = arith.constant 4 : index
    %c0_5 = arith.constant 0 : index
    %5 = vector.load %arg9[%c4, %c0_5] : memref<12x128xbf16, #tpu.memory_space<vmem>>, vector<4x128xbf16>
    tpu.vector_store %arg9[%c4, %c0_5], %4 {strides = array<i32>} : memref<12x128xbf16, #tpu.memory_space<vmem>>, vector<4x128xbf16>,
    %c0_6 = arith.constant 0 : index
    %c0_7 = arith.constant 0 : index
    %c128 = arith.constant 128 : index
    %6 = vector.load %arg1[%c0_6, %c0_7, %c128] : memref<1x4x256xbf16, #tpu.memory_space<vmem>>, vector<1x4x128xbf16>
    %7 = vector.shape_cast %6 : vector<1x4x128xbf16> to vector<4x128xbf16>
    %c8 = arith.constant 8 : index
    %c0_8 = arith.constant 0 : index
    %8 = vector.load %arg9[%c8, %c0_8] : memref<12x128xbf16, #tpu.memory_space<vmem>>, vector<4x128xbf16>
    tpu.vector_store %arg9[%c8, %c0_8], %7 {strides = array<i32>} : memref<12x128xbf16, #tpu.memory_space<vmem>>, vector<4x128xbf16>,
    %c0_9 = arith.constant 0 : index
    %c0_10 = arith.constant 0 : index
    %9 = vector.load %arg2[%c0_9, %c0_10] : memref<8x12xbf16, #tpu.memory_space<vmem>>, vector<8x12xbf16>
    %c0_11 = arith.constant 0 : index
    %c0_12 = arith.constant 0 : index
    %10 = vector.load %arg9[%c0_11, %c0_12] : memref<12x128xbf16, #tpu.memory_space<vmem>>, vector<12x128xbf16>
    %cst = arith.constant dense<0.000000e+00> : vector<8x128xf32>
    %11 = tpu.matmul %9, %10, %cst {dimension_numbers = #tpu.dot_dimension_numbers<[1], [0], [0], [1], [0, 0, 1, 1], [], []>} : vector<8x12xbf16>, vector<12x128xbf16>, vector<8x128xf32> -> vector<8x128xf32>
    %c0_13 = arith.constant 0 : index
    %c0_14 = arith.constant 0 : index
    %12 = vector.load %arg3[%c0_13, %c0_14] : memref<8x1xf32, #tpu.memory_space<vmem>>, vector<8x1xf32>
    %13 = vector.broadcast %12 : vector<8x1xf32> to vector<8x128xf32>
    %14 = arith.addf %11, %13 : vector<8x128xf32>
    %cst_15 = arith.constant 0.000000e+00 : f32
    %15 = vector.broadcast %cst_15 : f32 to vector<8x128xf32>
    %16 = arith.maximumf %14, %15 : vector<8x128xf32>
    %cst_16 = arith.constant 0.000000e+00 : bf16
    %17 = vector.broadcast %cst_16 : bf16 to vector<8x128xbf16>
    %c0_17 = arith.constant 0 : index
    %c0_18 = arith.constant 0 : index
    %18 = vector.load %arg10[%c0_17, %c0_18] : memref<8x256xbf16, #tpu.memory_space<vmem>>, vector<8x128xbf16>
    tpu.vector_store %arg10[%c0_17, %c0_18], %17 {strides = array<i32>} : memref<8x256xbf16, #tpu.memory_space<vmem>>, vector<8x128xbf16>,
    %19 = arith.truncf %16 : vector<8x128xf32> to vector<8x128xbf16>
    %c0_19 = arith.constant 0 : index
    %c128_20 = arith.constant 128 : index
    %20 = vector.load %arg10[%c0_19, %c128_20] : memref<8x256xbf16, #tpu.memory_space<vmem>>, vector<8x128xbf16>
    tpu.vector_store %arg10[%c0_19, %c128_20], %19 {strides = array<i32>} : memref<8x256xbf16, #tpu.memory_space<vmem>>, vector<8x128xbf16>,
    %c0_21 = arith.constant 0 : index
    %c124_22 = arith.constant 124 : index
    %21 = vector.load %arg10[%c0_21, %c124_22] : memref<8x256xbf16, #tpu.memory_space<vmem>>, vector<8x128xbf16>
    %c0_23 = arith.constant 0 : index
    %c0_24 = arith.constant 0 : index
    %22 = vector.load %arg11[%c0_23, %c0_24] : memref<24x128xbf16, #tpu.memory_space<vmem>>, vector<8x128xbf16>
    tpu.vector_store %arg11[%c0_23, %c0_24], %21 {strides = array<i32>} : memref<24x128xbf16, #tpu.memory_space<vmem>>, vector<8x128xbf16>,
    %c0_25 = arith.constant 0 : index
    %c126_26 = arith.constant 126 : index
    %23 = vector.load %arg10[%c0_25, %c126_26] : memref<8x256xbf16, #tpu.memory_space<vmem>>, vector<8x128xbf16>
    %c8_27 = arith.constant 8 : index
    %c0_28 = arith.constant 0 : index
    %24 = vector.load %arg11[%c8_27, %c0_28] : memref<24x128xbf16, #tpu.memory_space<vmem>>, vector<8x128xbf16>
    tpu.vector_store %arg11[%c8_27, %c0_28], %23 {strides = array<i32>} : memref<24x128xbf16, #tpu.memory_space<vmem>>, vector<8x128xbf16>,
    %c0_29 = arith.constant 0 : index
    %c128_30 = arith.constant 128 : index
    %25 = vector.load %arg10[%c0_29, %c128_30] : memref<8x256xbf16, #tpu.memory_space<vmem>>, vector<8x128xbf16>
    %c16 = arith.constant 16 : index
    %c0_31 = arith.constant 0 : index
    %26 = vector.load %arg11[%c16, %c0_31] : memref<24x128xbf16, #tpu.memory_space<vmem>>, vector<8x128xbf16>
    tpu.vector_store %arg11[%c16, %c0_31], %25 {strides = array<i32>} : memref<24x128xbf16, #tpu.memory_space<vmem>>, vector<8x128xbf16>,
    %c0_32 = arith.constant 0 : index
    %c0_33 = arith.constant 0 : index
    %27 = vector.load %arg4[%c0_32, %c0_33] : memref<8x24xbf16, #tpu.memory_space<vmem>>, vector<8x24xbf16>
    %c0_34 = arith.constant 0 : index
    %c0_35 = arith.constant 0 : index
    %28 = vector.load %arg11[%c0_34, %c0_35] : memref<24x128xbf16, #tpu.memory_space<vmem>>, vector<24x128xbf16>
    %cst_36 = arith.constant dense<0.000000e+00> : vector<8x128xf32>
    %29 = tpu.matmul %27, %28, %cst_36 {dimension_numbers = #tpu.dot_dimension_numbers<[1], [0], [0], [1], [0, 0, 1, 1], [], []>} : vector<8x24xbf16>, vector<24x128xbf16>, vector<8x128xf32> -> vector<8x128xf32>
    %c0_37 = arith.constant 0 : index
    %c0_38 = arith.constant 0 : index
    %30 = vector.load %arg5[%c0_37, %c0_38] : memref<8x1xf32, #tpu.memory_space<vmem>>, vector<8x1xf32>
    %31 = vector.broadcast %30 : vector<8x1xf32> to vector<8x128xf32>
    %32 = arith.addf %29, %31 : vector<8x128xf32>
    %cst_39 = arith.constant 0.000000e+00 : f32
    %33 = vector.broadcast %cst_39 : f32 to vector<8x128xf32>
    %34 = arith.maximumf %32, %33 : vector<8x128xf32>
    %c0_40 = arith.constant 0 : index
    %c0_41 = arith.constant 0 : index
    %c128_42 = arith.constant 128 : index
    %35 = vector.load %arg1[%c0_40, %c0_41, %c128_42] : memref<1x4x256xbf16, #tpu.memory_space<vmem>>, vector<1x4x128xbf16>
    %36 = vector.shape_cast %35 : vector<1x4x128xbf16> to vector<4x128xbf16>
    %c0_43 = arith.constant 0 : index
    %c0_44 = arith.constant 0 : index
    %37 = vector.load %arg6[%c0_43, %c0_44] : memref<8x4xbf16, #tpu.memory_space<vmem>>, vector<8x4xbf16>
    %cst_45 = arith.constant dense<0.000000e+00> : vector<8x128xf32>
    %38 = tpu.matmul %37, %36, %cst_45 {dimension_numbers = #tpu.dot_dimension_numbers<[1], [0], [0], [1], [0, 0, 1, 1], [], []>} : vector<8x4xbf16>, vector<4x128xbf16>, vector<8x128xf32> -> vector<8x128xf32>
    %c0_46 = arith.constant 0 : index
    %c0_47 = arith.constant 0 : index
    %39 = vector.load %arg7[%c0_46, %c0_47] : memref<8x1xf32, #tpu.memory_space<vmem>>, vector<8x1xf32>
    %40 = vector.broadcast %39 : vector<8x1xf32> to vector<8x128xf32>
    %41 = arith.addf %38, %40 : vector<8x128xf32>
    %42 = arith.addf %34, %41 : vector<8x128xf32>
    %cst_48 = arith.constant 0.000000e+00 : f32
    %43 = vector.broadcast %cst_48 : f32 to vector<8x128xf32>
    %44 = arith.maximumf %42, %43 : vector<8x128xf32>
    %c0_49 = arith.constant 0 : index
    %c0_50 = arith.constant 0 : index
    %c0_51 = arith.constant 0 : index
    %45 = vector.load %arg8[%c0_49, %c0_50, %c0_51] : memref<1x8x128xf32, #tpu.memory_space<vmem>>, vector<1x8x128xf32>
    %46 = vector.shape_cast %45 : vector<1x8x128xf32> to vector<8x128xf32>
    %47 = vector.shape_cast %44 : vector<8x128xf32> to vector<1x8x128xf32>
    tpu.vector_store %arg8[%c0_49, %c0_50, %c0_51], %47 {strides = array<i32>} : memref<1x8x128xf32, #tpu.memory_space<vmem>>, vector<1x8x128xf32>,
    return
  }
  func.func @transform_0(%arg0: i32) -> (i32, i32, i32) {
    %c0_i32 = arith.constant 0 : i32
    %c0_i32_0 = arith.constant 0 : i32
    %c0_i32_1 = arith.constant 0 : i32
    return %arg0, %c0_i32, %c0_i32_0 : i32, i32, i32
  }
  func.func @transform_1(%arg0: i32) -> (i32, i32) {
    %c0_i32 = arith.constant 0 : i32
    %c0_i32_0 = arith.constant 0 : i32
    %c0_i32_1 = arith.constant 0 : i32
    return %c0_i32, %c0_i32_0 : i32, i32
  }
  func.func @transform_2(%arg0: i32) -> (i32, i32) {
    %c0_i32 = arith.constant 0 : i32
    %c0_i32_0 = arith.constant 0 : i32
    %c0_i32_1 = arith.constant 0 : i32
    return %c0_i32, %c0_i32_0 : i32, i32
  }
  func.func @transform_3(%arg0: i32) -> (i32, i32) {
    %c0_i32 = arith.constant 0 : i32
    %c0_i32_0 = arith.constant 0 : i32
    %c0_i32_1 = arith.constant 0 : i32
    return %c0_i32, %c0_i32_0 : i32, i32
  }
  func.func @transform_4(%arg0: i32) -> (i32, i32) {
    %c0_i32 = arith.constant 0 : i32
    %c0_i32_0 = arith.constant 0 : i32
    %c0_i32_1 = arith.constant 0 : i32
    return %c0_i32, %c0_i32_0 : i32, i32
  }
  func.func @transform_5(%arg0: i32) -> (i32, i32) {
    %c0_i32 = arith.constant 0 : i32
    %c0_i32_0 = arith.constant 0 : i32
    %c0_i32_1 = arith.constant 0 : i32
    return %c0_i32, %c0_i32_0 : i32, i32
  }
  func.func @transform_6(%arg0: i32) -> (i32, i32) {
    %c0_i32 = arith.constant 0 : i32
    %c0_i32_0 = arith.constant 0 : i32
    %c0_i32_1 = arith.constant 0 : i32
    return %c0_i32, %c0_i32_0 : i32, i32
  }
  func.func @transform_7(%arg0: i32) -> (i32, i32, i32) {
    %c0_i32 = arith.constant 0 : i32
    %c0_i32_0 = arith.constant 0 : i32
    %c0_i32_1 = arith.constant 0 : i32
    return %arg0, %c0_i32, %c0_i32_0 : i32, i32, i32
  }
}

</mosaic_0001>

<bundles_post_ra>
// kernel: tpu_custom_call.1
= control target key start
LH: loop header
LB: loop body
LE: loop exit
PB: predicated region body
PF: predicated region fallthrough
CT: control target
= control target key end

     0   :  { %12 = vsyncpa [#allocation6], 0  ;;  %s933_s0 = inlined_call_operand.vmem [shape: bf16[2,4,256], index: 0, kind: input, shape index: {}]   ;;  %s934_s1 = inlined_call_operand.vmem [shape: bf16[8,12], index: 1, kind: input, shape index: {}]   ;;  %s935_s2 = inlined_call_operand.vmem [shape: f32[8,1], index: 2, kind: input, shape index: {}]   ;;  %s936_s3 = inlined_call_operand.vmem [shape: bf16[8,24], index: 3, kind: input, shape index: {}]   ;;  %s937_s4 = inlined_call_operand.vmem [shape: f32[8,1], index: 4, kind: input, shape index: {}]   ;;  %s938_s5 = inlined_call_operand.vmem [shape: bf16[8,4], index: 5, kind: input, shape index: {}]   ;;  %s939_s6 = inlined_call_operand.vmem [shape: f32[8,1], index: 6, kind: input, shape index: {}]   ;;  %s940_s7 = inlined_call_operand.hbm [shape: f32[2,8,128], index: 7, kind: output, shape index: {}]  }
   0x1   :  { %14 = vsyncpa [#allocation6 + $0x1], 0  ;;  %s803_s24 = smov 0   ;;  %s805_s25 = smov 0  }
   0x2   :  { %s807_s26 = smov 0   ;;  %s809_s27 = smov 0  }
   0x3 LB: > { %s824_s28 = sadd.s32 4294967295, %s754_s27   ;;  %s597_s29 = sadd.s32 4294967294, %s754_s27   ;;  %s754_s27 = sphi %s809_s27, %s946_s27   ;;  %s750_s26 = sphi %s807_s26, %s945_s26   ;;  %s746_s25 = sphi %s805_s25, %s944_s25   ;;  %s742_s24 = sphi %s803_s24, %s943_s24  }
   0x4   : > { %s828_s30 = sadd.s32 1, %s754_s27   ;;  %s179_s8 = sadd.s32 1, %s750_s26 }
   0x5   : > { %s176_s9 = ssub.s32 %s754_s27, %s828_s30  ;;  %p189_p0 = scmp.ne.s32.totalorder %s750_s26, %s746_s25 }
   0x6   : > { %p177_p1 = scmp.eq.s32.totalorder %s176_s9, 0  ;;  %p190_p2 = scmp.eq.s32.totalorder %s824_s28, 1 }
   0x7   : > { %p195_p3 = scmp.ne.s32.totalorder %s746_s25, %s742_s24  ;;  %p196_p4 = scmp.eq.s32.totalorder %s597_s29, 1 }
   0x8   : > { %s839_s10 = scalar_select %p177_p1, %s750_s26, %s179_s8  }
   0x9   : > { %p841_p5 = por %p190_p2, %p189_p0  ;;  %p845_p6 = por %p196_p4, %p195_p3 }
   0xa   : > { %p600_p7 = scmp.ge.s32.totalorder %s754_s27, 1  ;;  %p240_p8 = scmp.lt.s32.totalorder %s754_s27, 3 }
   0xc   : > { %p241_p9 = pnand %p600_p7, %p240_p8 }
   0xd   : > { %p272_p10 = scmp.lt.s32.totalorder (!%p241_p9), %s824_s28, 1  ;;  %s758_s18 = smov (!%p241_p9), 4  }
   0xe   : > { %244 = sbr.rel (%p241_p9) target bundleno = 709 (0x2c5), region = 48  ;;  %s759_s19 = smov (!%p241_p9), 2  }
   0xf   : > { %s612_s20 = sshll.u32 (!%p241_p9), %s824_s28, 7 }
  0x10   : > { %s536_s8 = scalar_lea.hbm (!%p241_p9), %s940_s7, %s612_s20 }
  0x13   : > { %v300_v0 = vlaneseq  ;;  %v756_v1 = vmov 1983009808   ;;  %s273_s13 = scalar_select %p272_p10, %s824_s28, 1  ;;  %v757_v4 = vmov 0.0   ;;  %vm760_vm0 = vmmov 0   ;;  %v316_v11 = vld [vmem:[%s935_s2] sm:$0xff] }
  0x14   : > { %v298_v2 = vunpack.c.l.s4 %v756_v1  ;;  %623 = vmatprep.subr.bf16.mxu0 %v757_v4  ;;  %629 = vmatprep.subr.bf16.mxu1 %v757_v4  ;;  %v761_v12 = vmov 0   ;;  %vm290_vm1 = vcmask 31744   ;;  %vm307_vm2 = vcmask 15360   ;;  %v313_v21 = vld [vmem:[%s934_s1] sm:$0xf] }
  0x15   : > { %v301_v3 = vshrl.u32 %v300_v0, 7  ;;  %s615_s14 = sshll.u32 %s273_s13, 2  ;;  %625 = vmatprep.mubr.msk.bf16.mxu0 %vm760_vm0, %v757_v4  ;;  %633 = vmatprep.mubr.msk.bf16.mxu1 %vm760_vm0, %v757_v4  ;;  %376 = vst [vmem:[#allocation3] sm:$0xf] %v761_v12  ;;  %vm331_vm3 = vcmask 1045504   ;;  %vm327_vm4 = vcmask 97280  }
  0x16   : > { %v299_v5 = vunpack.c.0.s8 %v298_v2  ;;  %s858_s17 = scalar_lea.vmem %s933_s0, %s615_s14  ;;  %688 = vset.pattern.permute.xlu1 %v761_v12  ;;  %689 = vset.pattern.permute.xlu0 %v761_v12  ;;  %vm477_vm5 = vcmask 1041408   ;;  %v466_v32 = vld [vmem:[%s938_s5] sm:$0xf]  ;;  %vm420_vm6 = vcmask 1043456   ;;  %vm416_vm7 = vcmask 195584   ;;  %s762_s14 = smov [#allocation5]  }
  0x17   : > { %v604_v7 = vld.sshfl [vmem:[%s858_s17] sm:$0x33 pattern:$0x76325410]  ;;  %319 = vperm.xlu1 %688, %v316_v11   ;;  %s698_s15 = sshll.u32 %s762_s14, 4  ;;  %s699_s15 = int_to_ptr.vmem [resolvable:$false] %s698_s15 }
  0x18   : > { %v302_v6 = vsub.s32 %v299_v5, %v301_v3  ;;  %v311_v8 = vld [vmem:[%s858_s17 + $0x2] sm:$0x3]  ;;  %287 = vrot.lane.b32.xlu0 %v604_v7, %s758_s18  ;;  %v690_v9 = vld [vmem:[%s858_s17] ss:$0 sps:$4 sm:$0xff]   ;;  %s700_s28 = scalar_lea.vmem %s699_s15, 256 }
  0x19   : > { %312 = vst [vmem:[#allocation2 + $0x4] sm:$0x3] %v311_v8  ;;  %v465_v29 = vld [vmem:[%s858_s17 + $0x2] sm:$0x3] }
  0x1a   : > { %v303_v10 = vrot.slane %v690_v9, %v302_v6  ;;  %v479_v31 = vsel %vm477_vm5, %v465_v29, 0  ;;  %v401_v35 = vld [vmem:[%s937_s4] sm:$0xff] }
  0x1b   : > { %v467_v36 = vld [vmem:[%s939_s6] sm:$0xff] }
  0x1c   : > { %304 = vrot.lane.b32.xlu0 %v303_v10, %s759_s19  ;;  %v397_v46 = vld [vmem:[%s936_s3] sm:$0xf] }
  0x8a   : > { %v288_v13 = vpop.permute.xlu0 %287 }
  0x8b   : > { %v289_v14 = vrot.slane %v288_v13, 4 }
  0x8d   : > { %v291_v15 = vsel %vm290_vm1, %v288_v13, %v289_v14 }
  0x8e   : > { %293 = vst [vmem:[#allocation2] sm:$0x3] %v291_v15  ;;  %v305_v16 = vpop.permute.xlu0 %304 }
  0x8f   : > { %v306_v17 = vrot.slane %v305_v16, 4 }
  0x91   : > { %v308_v18 = vsel %vm307_vm2, %v305_v16, %v306_v17 }
  0x92   : > { %310 = vst [vmem:[#allocation2] sm:$0xc] %v308_v18  ;;  %v320_v22 = vpop.permute.xlu1 %319 }
  0x99   : > { %v691_v19 = vld [vmem:[#allocation2] sm:$0x3f]  }
  0x9a   : > { %v333_v20 = vsel %vm331_vm3, %v691_v19, 0 }
  0x9b   : > { %624 = vmatpush3.bf16.msra.mxu0 %v333_v20 }
  0x9c   : > { %637 = vmatprep.subr.bf16.mxu0 %v757_v4 }
  0x9e   : > { %626 = vmatmul.mubr.msk.bf16.vlgmr.msra.gmra.mxu0 %vm327_vm4, %v313_v21 }
  0x9f   : > { %639 = vmatprep.mubr.msk.bf16.mxu0 %vm760_vm0, %v757_v4  ;;  %638 = vmatpush3.bf16.msra.mxu0 %v479_v31 }
  0xa6   : > { %640 = vmatmul.mubr.msk.bf16.vlgmr.msra.gmra.mxu0 %vm290_vm1, %v466_v32 }
 0x15e   : > { %v369_v23 = vpop.f32.mrf.mxu0 }
 0x15f   : > { %v370_v24 = vadd.f32 %v369_v23, %v320_v22 }
 0x160   : > { %v627_v25 = vpop.f32.mrf.mxu0 }
 0x161   : > { %v375_v26 = vmax.f32 %v370_v24, 0.0 }
 0x162   : > { %v372_v27 = vpop.f32.mrf.mxu0 }
 0x163   : > { %v377_v28 = vpack.c.bf16 %v375_v26, %v375_v26 }
 0x164   : > { %v628_v30 = vpop.f32.mrf.mxu0 }
 0x165   : > { %378 = vst [vmem:[#allocation3 + $0x4] sm:$0xf] %v377_v28 }
 0x166   : > { %v515_v47 = vpop.f32.mrf.mxu0 }
 0x168   : > { %v641_v48 = vpop.f32.mrf.mxu0 }
 0x16a   : > { %v518_v49 = vpop.f32.mrf.mxu0 }
 0x16c   : > { %v395_v33 = vld [vmem:[#allocation3 + $0x4] sm:$0xf]  ;;  %v642_v50 = vpop.f32.mrf.mxu0 }
 0x16d   : > { %v387_v34 = vld [vmem:[#allocation3] sm:$0xff]  ;;  %396 = vst [vmem:[#allocation4 + $0x8] sm:$0xf] %v395_v33 }
 0x16e   : > { %389 = vrot.lane.b32.xlu0 %v387_v34, %s759_s19  ;;  %381 = vrot.lane.b32.xlu1 %v387_v34, %s758_s18  ;;  %s269_s18 = sand.u32 1, %s746_s25  }
 0x16f   : > { %s601_s19 = sshll.u32 %s269_s18, 3  ;;  %s525_s9 = scalar_lea.sflag [#allocation6], %s269_s18 }
 0x170   : > { %s271_s21 = scalar_lea.vmem [#allocation5], %s601_s19 }
 0x171   : > { %s538_s22 = sshll.u32 %s271_s21, 4  ;;  %s539_s22 = int_to_ptr.vmem [resolvable:$true] %s538_s22 }
 0x172   : > { %404 = vperm.xlu1 %688, %v401_v35   ;;  %470 = vperm.xlu0 %689, %v467_v36   ;;  %s694_s13 = scalar_lea.vmem %s539_s22, 128  ;;  %p701_p0 = scmp.lt.s32.totalorder %s539_s22, %s699_s15 }
 0x173   : > { %p695_p11 = scmp.ne.s32.totalorder %s539_s22, %s694_s13  ;;  %p702_p1 = scmp.lt.s32.totalorder %s700_s28, %s694_s13 }
 0x174   : > { %v692_v37 = vld [vmem:[#allocation4 + $0x8] ss:$0 sps:$4 sm:$0xff]  }
 0x175   : > { %v422_v38 = vsel %vm420_vm6, %v692_v37, 0  ;;  %p696_p12 = pnand %p695_p11, %p841_p5  ;;  %p703_p2 = por %p702_p1, %p701_p0 }
 0x176   : > { %630 = vmatpush3.bf16.msra.mxu1 %v422_v38 }
 0x177   : > { %631 = vmatprep.subr.bf16.mxu1 %v757_v4  ;;  %p697_p13 = pneg %p696_p12 }
 0x179   : > { %p704_p3 = pnand %p703_p2, %p697_p13 }
 0x1e0   : > { %v390_v39 = vpop.permute.xlu0 %389  ;;  %v382_v40 = vpop.permute.xlu1 %381 }
 0x1e1   : > { %v391_v41 = vrot.slane %v390_v39, 4  ;;  %v383_v42 = vrot.slane %v382_v40, 4 }
 0x1e3   : > { %v392_v43 = vsel %vm307_vm2, %v390_v39, %v391_v41  ;;  %v384_v44 = vsel %vm290_vm1, %v382_v40, %v383_v42 }
 0x1e4   : > { %394 = vst [vmem:[#allocation4 + $0x4] sm:$0xf] %v392_v43  ;;  %386 = vst [vmem:[#allocation4] sm:$0xf] %v384_v44 }
 0x1eb   : > { %v693_v45 = vld [vmem:[#allocation4] sm:$0xff]  }
 0x1ec   : > { %632 = vmatpush3.bf16.msra.mxu1 %v693_v45 }
 0x1ed   : > { %v471_v51 = vpop.permute.xlu0 %470  ;;  %v405_v52 = vpop.permute.xlu1 %404 }
 0x1ee   : > { %v516_v55 = vadd.f32 %v515_v47, %v471_v51 }
 0x1ef   : > { %634 = vmatmul.mubr.msk.bf16.vlgmr.msra.gmra.mxu1 %vm416_vm7, %v397_v46 }
 0x2af   : > { %v458_v53 = vpop.f32.mrf.mxu1 }
 0x2b0   : > { %v459_v54 = vadd.f32 %v458_v53, %v405_v52 }
 0x2b1   : > { %v635_v56 = vpop.f32.mrf.mxu1 }
 0x2b2   : > { %v464_v57 = vmax.f32 %v459_v54, 0.0 }
 0x2b3   : > { %v461_v58 = vpop.f32.mrf.mxu1 }
 0x2b4   : > { %v521_v59 = vadd.f32 %v516_v55, %v464_v57 }
 0x2b5   : > { %v636_v60 = vpop.f32.mrf.mxu1 }
 0x2b6   : > { %v522_v61 = vmax.f32 %v521_v59, 0.0 }
 0x2b8   : > { %523 = vst [vmem:[%s271_s21] sm:$0xff] %v522_v61 }
 0x2b9   : > { %707 = shalt.err (!%p704_p3)
}
 0x2ba   : > { %s708_s16 = scalar_lea.hbm %s536_s8, 128  ;;  %s712_s19 = scalar_lea.hbm %s940_s7, 256 }
 0x2bb   : > { %p709_p4 = scmp.ne.s32.totalorder %s536_s8, %s708_s16  ;;  %p713_p9 = scmp.lt.s32.totalorder %s536_s8, %s940_s7 }
 0x2bc   : > { %p714_p10 = scmp.lt.s32.totalorder %s712_s19, %s708_s16 }
 0x2bd   : > { %p710_p7 = pnand %p709_p4, %p841_p5 }
 0x2be   : > { %p715_p11 = por %p714_p10, %p713_p9 }
 0x2bf   : > { %p711_p8 = pneg %p710_p7 }
 0x2c1   : > { %p716_p12 = pnand %p715_p11, %p711_p8 }
 0x2c3   : > { %719 = shalt.err (!%p716_p12)
}
 0x2c4   : > { %643 = dma.vmem_to_hbm [thread:$0]  (%p841_p5), %s539_s22, 128, %s536_s8, %s525_s9  }
 0x2c5 PF: > { %p649_p13 = scmp.ge.s32.totalorder %s754_s27, 2  ;;  %s550_s23 = sand.u32 1, %s742_s24  }
 0x2c6   : > { %s551_s29 = scalar_lea.sflag [#allocation6], %s550_s23 }
 0x2c7   : > { %p646_p0 = pnand %p649_p13, %p845_p6 }
 0x2c9   : > { %p647_p1 = pneg %p646_p0 }
 0x2cb   : > { %737 = dma.done.wait (%p647_p1), %s551_s29, 128  }
 0x2cc   : > { %739 = vsyncadd (%p647_p1), %s551_s29, 4294967168  ;;  %p17_p2 = scmp.ge.s32.totalorder %s828_s30, 4   ;;  %s943_s24 = smov %s746_s25 }
 0x2cd   : > { %s944_s25 = smov %s750_s26  ;;  %s945_s26 = smov %s839_s10 }
 0x2ce   : > { %s946_s27 = smov %s828_s30  ;;  %19 = sbr.rel (!%p17_p2) target bundleno = 3 (0x3), region = 83 }
 0x2d3   :  { %556 = vsyncpa [#allocation6], 1 }
 0x2d4   :  { %558 = vsyncpa [#allocation6 + $0x1], 1 }

</bundles_post_ra>
